<compile_context>
chip_gen: v5e
topology: v5e:2x2
jax: 0.10.0
libtpu: 0.0.40
codegen_flags: <defaults>
</compile_context>

<pallas_src>
import jax
import jax.numpy as jnp
from jax import lax
from jax.experimental import pallas as pl
from jax.experimental.pallas import tpu as pltpu


def _make_rnd_kernel(n_layers):
    """Two-stream MLP kernel. Activations are feature-major: (features, tile_n)."""
    n_params = 4 * n_layers + 3
    # Contract lhs dim 1 with rhs dim 1 (A @ B^T) -- same pattern as q @ k^T.
    dn = (((1,), (1,)), ((), ()))

    def kernel(x_ref, *refs):
        params = refs[:n_params]
        o_ref = refs[n_params]

        x = x_ref[...]                      # (tile_n, ob_dim) f32, batch-major

        if n_layers == 0:
            whf = params[0][...]
            whh = params[1][...]
            bd = params[2][...]
            xw = x.astype(whf.dtype)
            diff = (lax.dot_general(whf, xw, dn, preferred_element_type=jnp.float32)
                    - lax.dot_general(whh, xw, dn, preferred_element_type=jnp.float32)
                    + bd)
        else:
            wf0 = params[0][...]
            bf0 = params[1][...]
            wh0 = params[2][...]
            bh0 = params[3][...]
            xw = x.astype(wf0.dtype)
            # Layer 0: contracting the rhs minor dim avoids any host or
            # in-kernel transpose and yields feature-major (size, tile_n)
            # activations with the batch on the 128-wide lane axis.
            hf = jnp.tanh(
                lax.dot_general(wf0, xw, dn, preferred_element_type=jnp.float32) + bf0)
            hh = jnp.tanh(
                lax.dot_general(wh0, xw, dn, preferred_element_type=jnp.float32) + bh0)

            for i in range(1, n_layers):
                wf = params[4 * i][...]
                bf = params[4 * i + 1][...]
                wh = params[4 * i + 2][...]
                bh = params[4 * i + 3][...]
                hf = jnp.tanh(
                    jnp.dot(wf, hf.astype(wf.dtype),
                            preferred_element_type=jnp.float32) + bf)
                hh = jnp.tanh(
                    jnp.dot(wh, hh.astype(wh.dtype),
                            preferred_element_type=jnp.float32) + bh)

            whf = params[4 * n_layers][...]
            whh = params[4 * n_layers + 1][...]
            bd = params[4 * n_layers + 2][...]      # packed as (b_f - b_fhat)
            diff = (jnp.dot(whf, hf.astype(whf.dtype),
                            preferred_element_type=jnp.float32)
                    - jnp.dot(whh, hh.astype(whh.dtype),
                              preferred_element_type=jnp.float32)
                    + bd)

        # torch.linalg.norm(..., dim=1): sqrt of per-sample sum of squares.
        # Feature axis sits on sublanes -> cheap cross-sublane reduce; the
        # (1, tile_n) result is a lane-dense slab (unmasked vector stores).
        o_ref[...] = jnp.sqrt(jnp.sum(diff * diff, axis=0, keepdims=True))

    return kernel


def _pack_params(f_params, f_hat_params, n_layers, weights_dtype):
    """Transpose to (out_features, in_features) and keep f / f_hat separate.

    Biases become (out_features, 1) columns broadcasting over the lane/batch
    axis.  The head bias is folded to (b_f - b_fhat) so the head dots emit the
    prediction difference directly.
    """
    packed = []
    for i in range(n_layers):
        wf = f_params[2 * i].T.astype(weights_dtype)       # (out, in)
        bf = f_params[2 * i + 1].T.astype(jnp.float32)     # (out, 1)
        wh = f_hat_params[2 * i].T.astype(weights_dtype)
        bh = f_hat_params[2 * i + 1].T.astype(jnp.float32)
        packed += [wf, bf, wh, bh]
    whf = f_params[2 * n_layers].T.astype(weights_dtype)    # (output, in)
    whh = f_hat_params[2 * n_layers].T.astype(weights_dtype)
    bd = (f_params[2 * n_layers + 1]
          - f_hat_params[2 * n_layers + 1]).T.astype(jnp.float32)
    packed += [whf, whh, bd]
    return packed


def _prefer_bf16(size):
    """bf16 dot operands only pay off for large rnd_size and not on v5e."""
    if size is None or size < 128:
        return False
    try:
        kind = jax.devices()[0].device_kind.lower()
    except Exception:
        return False
    return not any(tag in kind for tag in ("v5 lite", "v5lite", "v5e"))


def rnd_forward(ob_no, f_params, f_hat_params, n_layers, output_size,
                *, tile_n=1024, weights_dtype=None):
    """RND prediction-error forward pass.

    ob_no:        (N, ob_dim) float32
    f_params:     flat list [W0, b0, ..., Wout, bout], W:(in,out), b:(1,out)
    f_hat_params: same structure for the predictor net f_hat
    returns:      (N,) float32 per-sample L2 prediction error
    """
    n, ob_dim = ob_no.shape
    size = f_params[0].shape[1] if n_layers > 0 else None
    if weights_dtype is None:
        weights_dtype = jnp.bfloat16 if _prefer_bf16(size) else jnp.float32

    # Keep tiles a multiple of 128 and cap tile_n so the "parallel" batch axis
    # has >= 2 grid steps whenever the batch is big enough (v7x has 2 TCs).
    tile_n = int(min(tile_n, max(128, 128 * pl.cdiv(n, 2 * 128))))
    n_pad = int(pl.cdiv(n, tile_n)) * tile_n

    # No transpose: pad batch rows with zeros; padded rows produce finite
    # values that are sliced off at the end.
    x = jnp.pad(ob_no.astype(jnp.float32), ((0, n_pad - n), (0, 0)))

    packed = _pack_params(f_params, f_hat_params, n_layers, weights_dtype)
    kernel = _make_rnd_kernel(n_layers)
    grid = (n_pad // tile_n,)

    # Scheduler hints (useful FLOPs only -- no block-diag zeros anymore).
    if n_layers > 0:
        mm = 2 * size * ob_dim + 2 * (n_layers - 1) * size * size \
            + 2 * output_size * size
        transcendentals = 2 * n_pad * size * n_layers
    else:
        mm = 2 * output_size * ob_dim
        transcendentals = 0
    flops = 2 * n_pad * mm
    weight_bytes = sum(int(p.size) * p.dtype.itemsize for p in packed)
    bytes_accessed = int(x.size) * 4 + weight_bytes + n_pad * 4

    # Scoped-VMEM budget: double-buffered input/output tiles + (ideally
    # single-buffered) resident weights + headroom; stays under v7x's 64 MiB.
    io_bytes = 2 * (tile_n * ob_dim * 4) + 2 * (tile_n * 4)
    vmem_limit = int(min(max(2 * weight_bytes + io_bytes + (8 << 20), 32 << 20),
                         56 << 20))

    def _run(single_buffer_weights):
        if single_buffer_weights:
            w_specs = [pl.BlockSpec(p.shape, lambda i: (0, 0),
                                    pipeline_mode=pl.Buffered(1))
                       for p in packed]
        else:
            w_specs = [pl.BlockSpec(p.shape, lambda i: (0, 0)) for p in packed]

        in_specs = [pl.BlockSpec((tile_n, ob_dim), lambda i: (i, 0))] + w_specs
        out = pl.pallas_call(
            kernel,
            out_shape=jax.ShapeDtypeStruct((1, n_pad), jnp.float32),
            grid=grid,
            in_specs=in_specs,
            out_specs=pl.BlockSpec((1, tile_n), lambda i: (0, i)),
            compiler_params=pltpu.CompilerParams(
                dimension_semantics=("parallel",),
                vmem_limit_bytes=vmem_limit),
            cost_estimate=pl.CostEstimate(
                flops=int(flops),
                transcendentals=int(transcendentals),
                bytes_accessed=int(bytes_accessed)),
        )(x, *packed)
        return jax.block_until_ready(out)

    try:
        out = _run(True)
    except Exception:
        # Fallback if single-buffered pipeline_mode is unsupported on this
        # jax/libtpu version -- default double-buffered weight specs.
        out = _run(False)
    return out[0, :n]


def _build_mlp_params(key, in_dim, out_dim, n_layers, size, init):
    """Deterministic synthetic params mirroring ptu.build_mlp's layer shapes.

    init='normal'  ~ init_method_2 (target net f)
    init='uniform' ~ init_method_1 (predictor net f_hat)
    """
    dims = [in_dim] + [size] * n_layers + [out_dim]
    params = []
    for d_in, d_out in zip(dims[:-1], dims[1:]):
        key, kw, kb = jax.random.split(key, 3)
        if init == "normal":
            w = jax.random.normal(kw, (d_in, d_out), dtype=jnp.float32)
            b = jax.random.normal(kb, (1, d_out), dtype=jnp.float32)
        else:  # uniform in [0, 1)
            w = jax.random.uniform(kw, (d_in, d_out), dtype=jnp.float32)
            b = jax.random.uniform(kb, (1, d_out), dtype=jnp.float32)
        params += [w, b]
    return params


def _reference_forward(ob_no, f_params, f_hat_params, n_layers):
    """Plain-JAX reference (batch-major, unfused) for correctness checking."""
    def mlp(x, params):
        h = x
        for i in range(n_layers):
            h = jnp.tanh(h @ params[2 * i] + params[2 * i + 1])
        return h @ params[2 * n_layers] + params[2 * n_layers + 1]

    d = mlp(ob_no, f_params) - mlp(ob_no, f_hat_params)
    return jnp.sqrt(jnp.sum(d * d, axis=1))


if __name__ == "__main__":
    # Small hparams consistent with the module: ob_dim, rnd_output_size,
    # rnd_n_layers, rnd_size.
    N = 8
    OB_DIM = 4
    OUTPUT_SIZE = 8
    N_LAYERS = 2
    SIZE = 32

    key = jax.random.PRNGKey(0)
    k_x, k_f, k_fh = jax.random.split(key, 3)

    ob_no = jax.random.normal(k_x, (N, OB_DIM), dtype=jnp.float32)
    f_params = _build_mlp_params(k_f, OB_DIM, OUTPUT_SIZE, N_LAYERS, SIZE,
                                 init="normal")      # init_method_2
    f_hat_params = _build_mlp_params(k_fh, OB_DIM, OUTPUT_SIZE, N_LAYERS, SIZE,
                                     init="uniform")  # init_method_1

    pred_err_n = rnd_forward(ob_no, f_params, f_hat_params, N_LAYERS,
                             OUTPUT_SIZE)
    pred_err_n = jax.block_until_ready(pred_err_n)

    ref = _reference_forward(ob_no, f_params, f_hat_params, N_LAYERS)
    assert pred_err_n.shape == (N,)
    assert jnp.allclose(pred_err_n, ref, rtol=2e-5, atol=1e-4)

    # TODO(synk): update()/optimizer/LR-scheduler (training step with backward
    # pass) is not part of the forward kernel and is left to standard JAX.
    print("KERNEL_OK")
</pallas_src>

<mosaic_0001>
module attributes {stable_mosaic.version = 11 : i64} {
  func.func @kernel(%arg0: i32, %arg1: memref<128x4xf32, #tpu.memory_space<vmem>>, %arg2: memref<32x4xf32, #tpu.memory_space<vmem>>, %arg3: memref<32x1xf32, #tpu.memory_space<vmem>>, %arg4: memref<32x4xf32, #tpu.memory_space<vmem>>, %arg5: memref<32x1xf32, #tpu.memory_space<vmem>>, %arg6: memref<32x32xf32, #tpu.memory_space<vmem>>, %arg7: memref<32x1xf32, #tpu.memory_space<vmem>>, %arg8: memref<32x32xf32, #tpu.memory_space<vmem>>, %arg9: memref<32x1xf32, #tpu.memory_space<vmem>>, %arg10: memref<8x32xf32, #tpu.memory_space<vmem>>, %arg11: memref<8x32xf32, #tpu.memory_space<vmem>>, %arg12: memref<8x1xf32, #tpu.memory_space<vmem>>, %arg13: memref<1x128xf32, #tpu.memory_space<vmem>>) attributes {dimension_semantics = [#tpu.dimension_semantics<parallel>], iteration_bounds = array<i64: 1>, scalar_prefetch = 0 : i64, scratch_operands = 0 : i64, tpu.core_type = #tpu.core_type<tc>, window_params = [{transform_indices = @transform_0, window_bounds = array<i64: 128, 4>}, {pipeline_mode = #tpu.pipeline_mode<synchronous>, transform_indices = @transform_1, window_bounds = array<i64: 32, 4>}, {pipeline_mode = #tpu.pipeline_mode<synchronous>, transform_indices = @transform_2, window_bounds = array<i64: 32, 1>}, {pipeline_mode = #tpu.pipeline_mode<synchronous>, transform_indices = @transform_3, window_bounds = array<i64: 32, 4>}, {pipeline_mode = #tpu.pipeline_mode<synchronous>, transform_indices = @transform_4, window_bounds = array<i64: 32, 1>}, {pipeline_mode = #tpu.pipeline_mode<synchronous>, transform_indices = @transform_5, window_bounds = array<i64: 32, 32>}, {pipeline_mode = #tpu.pipeline_mode<synchronous>, transform_indices = @transform_6, window_bounds = array<i64: 32, 1>}, {pipeline_mode = #tpu.pipeline_mode<synchronous>, transform_indices = @transform_7, window_bounds = array<i64: 32, 32>}, {pipeline_mode = #tpu.pipeline_mode<synchronous>, transform_indices = @transform_8, window_bounds = array<i64: 32, 1>}, {pipeline_mode = #tpu.pipeline_mode<synchronous>, transform_indices = @transform_9, window_bounds = array<i64: 8, 32>}, {pipeline_mode = #tpu.pipeline_mode<synchronous>, transform_indices = @transform_10, window_bounds = array<i64: 8, 32>}, {pipeline_mode = #tpu.pipeline_mode<synchronous>, transform_indices = @transform_11, window_bounds = array<i64: 8, 1>}, {transform_indices = @transform_12, window_bounds = array<i64: 1, 128>}]} {
    %c0 = arith.constant 0 : index
    %c0_0 = arith.constant 0 : index
    %0 = vector.load %arg1[%c0, %c0_0] : memref<128x4xf32, #tpu.memory_space<vmem>>, vector<128x4xf32>
    %c0_1 = arith.constant 0 : index
    %c0_2 = arith.constant 0 : index
    %1 = vector.load %arg2[%c0_1, %c0_2] : memref<32x4xf32, #tpu.memory_space<vmem>>, vector<32x4xf32>
    %c0_3 = arith.constant 0 : index
    %c0_4 = arith.constant 0 : index
    %2 = vector.load %arg3[%c0_3, %c0_4] : memref<32x1xf32, #tpu.memory_space<vmem>>, vector<32x1xf32>
    %c0_5 = arith.constant 0 : index
    %c0_6 = arith.constant 0 : index
    %3 = vector.load %arg4[%c0_5, %c0_6] : memref<32x4xf32, #tpu.memory_space<vmem>>, vector<32x4xf32>
    %c0_7 = arith.constant 0 : index
    %c0_8 = arith.constant 0 : index
    %4 = vector.load %arg5[%c0_7, %c0_8] : memref<32x1xf32, #tpu.memory_space<vmem>>, vector<32x1xf32>
    %cst = arith.constant dense<0.000000e+00> : vector<32x128xf32>
    %5 = tpu.matmul %1, %0, %cst {dimension_numbers = #tpu.dot_dimension_numbers<[1], [1], [0], [0], [0, 0, 1, 0], [], []>} : vector<32x4xf32>, vector<128x4xf32>, vector<32x128xf32> -> vector<32x128xf32>
    %6 = vector.broadcast %2 : vector<32x1xf32> to vector<32x128xf32>
    %7 = arith.addf %5, %6 : vector<32x128xf32>
    %8 = math.tanh %7 : vector<32x128xf32>
    %cst_9 = arith.constant dense<0.000000e+00> : vector<32x128xf32>
    %9 = tpu.matmul %3, %0, %cst_9 {dimension_numbers = #tpu.dot_dimension_numbers<[1], [1], [0], [0], [0, 0, 1, 0], [], []>} : vector<32x4xf32>, vector<128x4xf32>, vector<32x128xf32> -> vector<32x128xf32>
    %10 = vector.broadcast %4 : vector<32x1xf32> to vector<32x128xf32>
    %11 = arith.addf %9, %10 : vector<32x128xf32>
    %12 = math.tanh %11 : vector<32x128xf32>
    %c0_10 = arith.constant 0 : index
    %c0_11 = arith.constant 0 : index
    %13 = vector.load %arg6[%c0_10, %c0_11] : memref<32x32xf32, #tpu.memory_space<vmem>>, vector<32x32xf32>
    %c0_12 = arith.constant 0 : index
    %c0_13 = arith.constant 0 : index
    %14 = vector.load %arg7[%c0_12, %c0_13] : memref<32x1xf32, #tpu.memory_space<vmem>>, vector<32x1xf32>
    %c0_14 = arith.constant 0 : index
    %c0_15 = arith.constant 0 : index
    %15 = vector.load %arg8[%c0_14, %c0_15] : memref<32x32xf32, #tpu.memory_space<vmem>>, vector<32x32xf32>
    %c0_16 = arith.constant 0 : index
    %c0_17 = arith.constant 0 : index
    %16 = vector.load %arg9[%c0_16, %c0_17] : memref<32x1xf32, #tpu.memory_space<vmem>>, vector<32x1xf32>
    %cst_18 = arith.constant dense<0.000000e+00> : vector<32x128xf32>
    %17 = tpu.matmul %13, %8, %cst_18 {dimension_numbers = #tpu.dot_dimension_numbers<[1], [0], [0], [1], [0, 0, 1, 1], [], []>} : vector<32x32xf32>, vector<32x128xf32>, vector<32x128xf32> -> vector<32x128xf32>
    %18 = vector.broadcast %14 : vector<32x1xf32> to vector<32x128xf32>
    %19 = arith.addf %17, %18 : vector<32x128xf32>
    %20 = math.tanh %19 : vector<32x128xf32>
    %cst_19 = arith.constant dense<0.000000e+00> : vector<32x128xf32>
    %21 = tpu.matmul %15, %12, %cst_19 {dimension_numbers = #tpu.dot_dimension_numbers<[1], [0], [0], [1], [0, 0, 1, 1], [], []>} : vector<32x32xf32>, vector<32x128xf32>, vector<32x128xf32> -> vector<32x128xf32>
    %22 = vector.broadcast %16 : vector<32x1xf32> to vector<32x128xf32>
    %23 = arith.addf %21, %22 : vector<32x128xf32>
    %24 = math.tanh %23 : vector<32x128xf32>
    %c0_20 = arith.constant 0 : index
    %c0_21 = arith.constant 0 : index
    %25 = vector.load %arg10[%c0_20, %c0_21] : memref<8x32xf32, #tpu.memory_space<vmem>>, vector<8x32xf32>
    %c0_22 = arith.constant 0 : index
    %c0_23 = arith.constant 0 : index
    %26 = vector.load %arg11[%c0_22, %c0_23] : memref<8x32xf32, #tpu.memory_space<vmem>>, vector<8x32xf32>
    %c0_24 = arith.constant 0 : index
    %c0_25 = arith.constant 0 : index
    %27 = vector.load %arg12[%c0_24, %c0_25] : memref<8x1xf32, #tpu.memory_space<vmem>>, vector<8x1xf32>
    %cst_26 = arith.constant dense<0.000000e+00> : vector<8x128xf32>
    %28 = tpu.matmul %25, %20, %cst_26 {dimension_numbers = #tpu.dot_dimension_numbers<[1], [0], [0], [1], [0, 0, 1, 1], [], []>} : vector<8x32xf32>, vector<32x128xf32>, vector<8x128xf32> -> vector<8x128xf32>
    %cst_27 = arith.constant dense<0.000000e+00> : vector<8x128xf32>
    %29 = tpu.matmul %26, %24, %cst_27 {dimension_numbers = #tpu.dot_dimension_numbers<[1], [0], [0], [1], [0, 0, 1, 1], [], []>} : vector<8x32xf32>, vector<32x128xf32>, vector<8x128xf32> -> vector<8x128xf32>
    %30 = arith.subf %28, %29 : vector<8x128xf32>
    %31 = vector.broadcast %27 : vector<8x1xf32> to vector<8x128xf32>
    %32 = arith.addf %30, %31 : vector<8x128xf32>
    %33 = arith.mulf %32, %32 : vector<8x128xf32>
    %cst_28 = arith.constant dense<0.000000e+00> : vector<128xf32>
    %34 = vector.multi_reduction <add>, %33, %cst_28 [0] : vector<8x128xf32> to vector<128xf32>
    %35 = vector.shape_cast %34 : vector<128xf32> to vector<1x128xf32>
    %36 = math.sqrt %35 : vector<1x128xf32>
    %c0_29 = arith.constant 0 : index
    %c0_30 = arith.constant 0 : index
    %37 = vector.load %arg13[%c0_29, %c0_30] : memref<1x128xf32, #tpu.memory_space<vmem>>, vector<1x128xf32>
    tpu.vector_store %arg13[%c0_29, %c0_30], %36 {strides = array<i32>} : memref<1x128xf32, #tpu.memory_space<vmem>>, vector<1x128xf32>,
    return
  }
  func.func @transform_0(%arg0: i32) -> (i32, i32) {
    %c0_i32 = arith.constant 0 : i32
    %c0_i32_0 = arith.constant 0 : i32
    return %arg0, %c0_i32 : i32, i32
  }
  func.func @transform_1(%arg0: i32) -> (i32, i32) {
    %c0_i32 = arith.constant 0 : i32
    %c0_i32_0 = arith.constant 0 : i32
    %c0_i32_1 = arith.constant 0 : i32
    return %c0_i32, %c0_i32_0 : i32, i32
  }
  func.func @transform_2(%arg0: i32) -> (i32, i32) {
    %c0_i32 = arith.constant 0 : i32
    %c0_i32_0 = arith.constant 0 : i32
    %c0_i32_1 = arith.constant 0 : i32
    return %c0_i32, %c0_i32_0 : i32, i32
  }
  func.func @transform_3(%arg0: i32) -> (i32, i32) {
    %c0_i32 = arith.constant 0 : i32
    %c0_i32_0 = arith.constant 0 : i32
    %c0_i32_1 = arith.constant 0 : i32
    return %c0_i32, %c0_i32_0 : i32, i32
  }
  func.func @transform_4(%arg0: i32) -> (i32, i32) {
    %c0_i32 = arith.constant 0 : i32
    %c0_i32_0 = arith.constant 0 : i32
    %c0_i32_1 = arith.constant 0 : i32
    return %c0_i32, %c0_i32_0 : i32, i32
  }
  func.func @transform_5(%arg0: i32) -> (i32, i32) {
    %c0_i32 = arith.constant 0 : i32
    %c0_i32_0 = arith.constant 0 : i32
    %c0_i32_1 = arith.constant 0 : i32
    return %c0_i32, %c0_i32_0 : i32, i32
  }
  func.func @transform_6(%arg0: i32) -> (i32, i32) {
    %c0_i32 = arith.constant 0 : i32
    %c0_i32_0 = arith.constant 0 : i32
    %c0_i32_1 = arith.constant 0 : i32
    return %c0_i32, %c0_i32_0 : i32, i32
  }
  func.func @transform_7(%arg0: i32) -> (i32, i32) {
    %c0_i32 = arith.constant 0 : i32
    %c0_i32_0 = arith.constant 0 : i32
    %c0_i32_1 = arith.constant 0 : i32
    return %c0_i32, %c0_i32_0 : i32, i32
  }
  func.func @transform_8(%arg0: i32) -> (i32, i32) {
    %c0_i32 = arith.constant 0 : i32
    %c0_i32_0 = arith.constant 0 : i32
    %c0_i32_1 = arith.constant 0 : i32
    return %c0_i32, %c0_i32_0 : i32, i32
  }
  func.func @transform_9(%arg0: i32) -> (i32, i32) {
    %c0_i32 = arith.constant 0 : i32
    %c0_i32_0 = arith.constant 0 : i32
    %c0_i32_1 = arith.constant 0 : i32
    return %c0_i32, %c0_i32_0 : i32, i32
  }
  func.func @transform_10(%arg0: i32) -> (i32, i32) {
    %c0_i32 = arith.constant 0 : i32
    %c0_i32_0 = arith.constant 0 : i32
    %c0_i32_1 = arith.constant 0 : i32
    return %c0_i32, %c0_i32_0 : i32, i32
  }
  func.func @transform_11(%arg0: i32) -> (i32, i32) {
    %c0_i32 = arith.constant 0 : i32
    %c0_i32_0 = arith.constant 0 : i32
    %c0_i32_1 = arith.constant 0 : i32
    return %c0_i32, %c0_i32_0 : i32, i32
  }
  func.func @transform_12(%arg0: i32) -> (i32, i32) {
    %c0_i32 = arith.constant 0 : i32
    %c0_i32_0 = arith.constant 0 : i32
    return %c0_i32, %arg0 : i32, i32
  }
}

module attributes {stable_mosaic.version = 11 : i64} {
  func.func @kernel(%arg0: i32, %arg1: memref<128x4xf32, #tpu.memory_space<vmem>>, %arg2: memref<32x4xf32, #tpu.memory_space<vmem>>, %arg3: memref<32x1xf32, #tpu.memory_space<vmem>>, %arg4: memref<32x4xf32, #tpu.memory_space<vmem>>, %arg5: memref<32x1xf32, #tpu.memory_space<vmem>>, %arg6: memref<32x32xf32, #tpu.memory_space<vmem>>, %arg7: memref<32x1xf32, #tpu.memory_space<vmem>>, %arg8: memref<32x32xf32, #tpu.memory_space<vmem>>, %arg9: memref<32x1xf32, #tpu.memory_space<vmem>>, %arg10: memref<8x32xf32, #tpu.memory_space<vmem>>, %arg11: memref<8x32xf32, #tpu.memory_space<vmem>>, %arg12: memref<8x1xf32, #tpu.memory_space<vmem>>, %arg13: memref<1x128xf32, #tpu.memory_space<vmem>>) attributes {dimension_semantics = [#tpu.dimension_semantics<parallel>], iteration_bounds = array<i64: 1>, scalar_prefetch = 0 : i64, scratch_operands = 0 : i64, tpu.core_type = #tpu.core_type<tc>, window_params = [{transform_indices = @transform_0, window_bounds = array<i64: 128, 4>}, {pipeline_mode = #tpu.pipeline_mode<synchronous>, transform_indices = @transform_1, window_bounds = array<i64: 32, 4>}, {pipeline_mode = #tpu.pipeline_mode<synchronous>, transform_indices = @transform_2, window_bounds = array<i64: 32, 1>}, {pipeline_mode = #tpu.pipeline_mode<synchronous>, transform_indices = @transform_3, window_bounds = array<i64: 32, 4>}, {pipeline_mode = #tpu.pipeline_mode<synchronous>, transform_indices = @transform_4, window_bounds = array<i64: 32, 1>}, {pipeline_mode = #tpu.pipeline_mode<synchronous>, transform_indices = @transform_5, window_bounds = array<i64: 32, 32>}, {pipeline_mode = #tpu.pipeline_mode<synchronous>, transform_indices = @transform_6, window_bounds = array<i64: 32, 1>}, {pipeline_mode = #tpu.pipeline_mode<synchronous>, transform_indices = @transform_7, window_bounds = array<i64: 32, 32>}, {pipeline_mode = #tpu.pipeline_mode<synchronous>, transform_indices = @transform_8, window_bounds = array<i64: 32, 1>}, {pipeline_mode = #tpu.pipeline_mode<synchronous>, transform_indices = @transform_9, window_bounds = array<i64: 8, 32>}, {pipeline_mode = #tpu.pipeline_mode<synchronous>, transform_indices = @transform_10, window_bounds = array<i64: 8, 32>}, {pipeline_mode = #tpu.pipeline_mode<synchronous>, transform_indices = @transform_11, window_bounds = array<i64: 8, 1>}, {transform_indices = @transform_12, window_bounds = array<i64: 1, 128>}]} {
    %c0 = arith.constant 0 : index
    %c0_0 = arith.constant 0 : index
    %0 = vector.load %arg1[%c0, %c0_0] : memref<128x4xf32, #tpu.memory_space<vmem>>, vector<128x4xf32>
    %c0_1 = arith.constant 0 : index
    %c0_2 = arith.constant 0 : index
    %1 = vector.load %arg2[%c0_1, %c0_2] : memref<32x4xf32, #tpu.memory_space<vmem>>, vector<32x4xf32>
    %c0_3 = arith.constant 0 : index
    %c0_4 = arith.constant 0 : index
    %2 = vector.load %arg3[%c0_3, %c0_4] : memref<32x1xf32, #tpu.memory_space<vmem>>, vector<32x1xf32>
    %c0_5 = arith.constant 0 : index
    %c0_6 = arith.constant 0 : index
    %3 = vector.load %arg4[%c0_5, %c0_6] : memref<32x4xf32, #tpu.memory_space<vmem>>, vector<32x4xf32>
    %c0_7 = arith.constant 0 : index
    %c0_8 = arith.constant 0 : index
    %4 = vector.load %arg5[%c0_7, %c0_8] : memref<32x1xf32, #tpu.memory_space<vmem>>, vector<32x1xf32>
    %cst = arith.constant dense<0.000000e+00> : vector<32x128xf32>
    %5 = tpu.matmul %1, %0, %cst {dimension_numbers = #tpu.dot_dimension_numbers<[1], [1], [0], [0], [0, 0, 1, 0], [], []>} : vector<32x4xf32>, vector<128x4xf32>, vector<32x128xf32> -> vector<32x128xf32>
    %6 = vector.broadcast %2 : vector<32x1xf32> to vector<32x128xf32>
    %7 = arith.addf %5, %6 : vector<32x128xf32>
    %8 = math.tanh %7 : vector<32x128xf32>
    %cst_9 = arith.constant dense<0.000000e+00> : vector<32x128xf32>
    %9 = tpu.matmul %3, %0, %cst_9 {dimension_numbers = #tpu.dot_dimension_numbers<[1], [1], [0], [0], [0, 0, 1, 0], [], []>} : vector<32x4xf32>, vector<128x4xf32>, vector<32x128xf32> -> vector<32x128xf32>
    %10 = vector.broadcast %4 : vector<32x1xf32> to vector<32x128xf32>
    %11 = arith.addf %9, %10 : vector<32x128xf32>
    %12 = math.tanh %11 : vector<32x128xf32>
    %c0_10 = arith.constant 0 : index
    %c0_11 = arith.constant 0 : index
    %13 = vector.load %arg6[%c0_10, %c0_11] : memref<32x32xf32, #tpu.memory_space<vmem>>, vector<32x32xf32>
    %c0_12 = arith.constant 0 : index
    %c0_13 = arith.constant 0 : index
    %14 = vector.load %arg7[%c0_12, %c0_13] : memref<32x1xf32, #tpu.memory_space<vmem>>, vector<32x1xf32>
    %c0_14 = arith.constant 0 : index
    %c0_15 = arith.constant 0 : index
    %15 = vector.load %arg8[%c0_14, %c0_15] : memref<32x32xf32, #tpu.memory_space<vmem>>, vector<32x32xf32>
    %c0_16 = arith.constant 0 : index
    %c0_17 = arith.constant 0 : index
    %16 = vector.load %arg9[%c0_16, %c0_17] : memref<32x1xf32, #tpu.memory_space<vmem>>, vector<32x1xf32>
    %cst_18 = arith.constant dense<0.000000e+00> : vector<32x128xf32>
    %17 = tpu.matmul %13, %8, %cst_18 {dimension_numbers = #tpu.dot_dimension_numbers<[1], [0], [0], [1], [0, 0, 1, 1], [], []>} : vector<32x32xf32>, vector<32x128xf32>, vector<32x128xf32> -> vector<32x128xf32>
    %18 = vector.broadcast %14 : vector<32x1xf32> to vector<32x128xf32>
    %19 = arith.addf %17, %18 : vector<32x128xf32>
    %20 = math.tanh %19 : vector<32x128xf32>
    %cst_19 = arith.constant dense<0.000000e+00> : vector<32x128xf32>
    %21 = tpu.matmul %15, %12, %cst_19 {dimension_numbers = #tpu.dot_dimension_numbers<[1], [0], [0], [1], [0, 0, 1, 1], [], []>} : vector<32x32xf32>, vector<32x128xf32>, vector<32x128xf32> -> vector<32x128xf32>
    %22 = vector.broadcast %16 : vector<32x1xf32> to vector<32x128xf32>
    %23 = arith.addf %21, %22 : vector<32x128xf32>
    %24 = math.tanh %23 : vector<32x128xf32>
    %c0_20 = arith.constant 0 : index
    %c0_21 = arith.constant 0 : index
    %25 = vector.load %arg10[%c0_20, %c0_21] : memref<8x32xf32, #tpu.memory_space<vmem>>, vector<8x32xf32>
    %c0_22 = arith.constant 0 : index
    %c0_23 = arith.constant 0 : index
    %26 = vector.load %arg11[%c0_22, %c0_23] : memref<8x32xf32, #tpu.memory_space<vmem>>, vector<8x32xf32>
    %c0_24 = arith.constant 0 : index
    %c0_25 = arith.constant 0 : index
    %27 = vector.load %arg12[%c0_24, %c0_25] : memref<8x1xf32, #tpu.memory_space<vmem>>, vector<8x1xf32>
    %cst_26 = arith.constant dense<0.000000e+00> : vector<8x128xf32>
    %28 = tpu.matmul %25, %20, %cst_26 {dimension_numbers = #tpu.dot_dimension_numbers<[1], [0], [0], [1], [0, 0, 1, 1], [], []>} : vector<8x32xf32>, vector<32x128xf32>, vector<8x128xf32> -> vector<8x128xf32>
    %cst_27 = arith.constant dense<0.000000e+00> : vector<8x128xf32>
    %29 = tpu.matmul %26, %24, %cst_27 {dimension_numbers = #tpu.dot_dimension_numbers<[1], [0], [0], [1], [0, 0, 1, 1], [], []>} : vector<8x32xf32>, vector<32x128xf32>, vector<8x128xf32> -> vector<8x128xf32>
    %30 = arith.subf %28, %29 : vector<8x128xf32>
    %31 = vector.broadcast %27 : vector<8x1xf32> to vector<8x128xf32>
    %32 = arith.addf %30, %31 : vector<8x128xf32>
    %33 = arith.mulf %32, %32 : vector<8x128xf32>
    %cst_28 = arith.constant dense<0.000000e+00> : vector<128xf32>
    %34 = vector.multi_reduction <add>, %33, %cst_28 [0] : vector<8x128xf32> to vector<128xf32>
    %35 = vector.shape_cast %34 : vector<128xf32> to vector<1x128xf32>
    %36 = math.sqrt %35 : vector<1x128xf32>
    %c0_29 = arith.constant 0 : index
    %c0_30 = arith.constant 0 : index
    %37 = vector.load %arg13[%c0_29, %c0_30] : memref<1x128xf32, #tpu.memory_space<vmem>>, vector<1x128xf32>
    tpu.vector_store %arg13[%c0_29, %c0_30], %36 {strides = array<i32>} : memref<1x128xf32, #tpu.memory_space<vmem>>, vector<1x128xf32>,
    return
  }
  func.func @transform_0(%arg0: i32) -> (i32, i32) {
    %c0_i32 = arith.constant 0 : i32
    %c0_i32_0 = arith.constant 0 : i32
    return %arg0, %c0_i32 : i32, i32
  }
  func.func @transform_1(%arg0: i32) -> (i32, i32) {
    %c0_i32 = arith.constant 0 : i32
    %c0_i32_0 = arith.constant 0 : i32
    %c0_i32_1 = arith.constant 0 : i32
    return %c0_i32, %c0_i32_0 : i32, i32
  }
  func.func @transform_2(%arg0: i32) -> (i32, i32) {
    %c0_i32 = arith.constant 0 : i32
    %c0_i32_0 = arith.constant 0 : i32
    %c0_i32_1 = arith.constant 0 : i32
    return %c0_i32, %c0_i32_0 : i32, i32
  }
  func.func @transform_3(%arg0: i32) -> (i32, i32) {
    %c0_i32 = arith.constant 0 : i32
    %c0_i32_0 = arith.constant 0 : i32
    %c0_i32_1 = arith.constant 0 : i32
    return %c0_i32, %c0_i32_0 : i32, i32
  }
  func.func @transform_4(%arg0: i32) -> (i32, i32) {
    %c0_i32 = arith.constant 0 : i32
    %c0_i32_0 = arith.constant 0 : i32
    %c0_i32_1 = arith.constant 0 : i32
    return %c0_i32, %c0_i32_0 : i32, i32
  }
  func.func @transform_5(%arg0: i32) -> (i32, i32) {
    %c0_i32 = arith.constant 0 : i32
    %c0_i32_0 = arith.constant 0 : i32
    %c0_i32_1 = arith.constant 0 : i32
    return %c0_i32, %c0_i32_0 : i32, i32
  }
  func.func @transform_6(%arg0: i32) -> (i32, i32) {
    %c0_i32 = arith.constant 0 : i32
    %c0_i32_0 = arith.constant 0 : i32
    %c0_i32_1 = arith.constant 0 : i32
    return %c0_i32, %c0_i32_0 : i32, i32
  }
  func.func @transform_7(%arg0: i32) -> (i32, i32) {
    %c0_i32 = arith.constant 0 : i32
    %c0_i32_0 = arith.constant 0 : i32
    %c0_i32_1 = arith.constant 0 : i32
    return %c0_i32, %c0_i32_0 : i32, i32
  }
  func.func @transform_8(%arg0: i32) -> (i32, i32) {
    %c0_i32 = arith.constant 0 : i32
    %c0_i32_0 = arith.constant 0 : i32
    %c0_i32_1 = arith.constant 0 : i32
    return %c0_i32, %c0_i32_0 : i32, i32
  }
  func.func @transform_9(%arg0: i32) -> (i32, i32) {
    %c0_i32 = arith.constant 0 : i32
    %c0_i32_0 = arith.constant 0 : i32
    %c0_i32_1 = arith.constant 0 : i32
    return %c0_i32, %c0_i32_0 : i32, i32
  }
  func.func @transform_10(%arg0: i32) -> (i32, i32) {
    %c0_i32 = arith.constant 0 : i32
    %c0_i32_0 = arith.constant 0 : i32
    %c0_i32_1 = arith.constant 0 : i32
    return %c0_i32, %c0_i32_0 : i32, i32
  }
  func.func @transform_11(%arg0: i32) -> (i32, i32) {
    %c0_i32 = arith.constant 0 : i32
    %c0_i32_0 = arith.constant 0 : i32
    %c0_i32_1 = arith.constant 0 : i32
    return %c0_i32, %c0_i32_0 : i32, i32
  }
  func.func @transform_12(%arg0: i32) -> (i32, i32) {
    %c0_i32 = arith.constant 0 : i32
    %c0_i32_0 = arith.constant 0 : i32
    return %c0_i32, %arg0 : i32, i32
  }
}

</mosaic_0001>

<bundles_post_ra>
// kernel: tpu_custom_call.1
= control target key start
LH: loop header
LB: loop body
LE: loop exit
PB: predicated region body
PF: predicated region fallthrough
CT: control target
= control target key end

     0   :  { %vm94_vm0 = vcmask 31744   ;;  %s880_s0 = inlined_call_operand.vmem [shape: f32[128,4], index: 0, kind: input, shape index: {}]   ;;  %s881_s1 = inlined_call_operand.vmem [shape: f32[32,4], index: 1, kind: input, shape index: {}]   ;;  %s882_s2 = inlined_call_operand.vmem [shape: f32[32,1], index: 2, kind: input, shape index: {}]   ;;  %s883_s3 = inlined_call_operand.vmem [shape: f32[32,4], index: 3, kind: input, shape index: {}]   ;;  %s884_s4 = inlined_call_operand.vmem [shape: f32[32,1], index: 4, kind: input, shape index: {}]   ;;  %s885_s5 = inlined_call_operand.vmem [shape: f32[32,32], index: 5, kind: input, shape index: {}]   ;;  %s886_s6 = inlined_call_operand.vmem [shape: f32[32,1], index: 6, kind: input, shape index: {}]   ;;  %s887_s7 = inlined_call_operand.vmem [shape: f32[32,32], index: 7, kind: input, shape index: {}]   ;;  %s888_s8 = inlined_call_operand.vmem [shape: f32[32,1], index: 8, kind: input, shape index: {}]   ;;  %s889_s9 = inlined_call_operand.vmem [shape: f32[8,32], index: 9, kind: input, shape index: {}]   ;;  %s890_s10 = inlined_call_operand.vmem [shape: f32[8,32], index: 10, kind: input, shape index: {}]   ;;  %s891_s11 = inlined_call_operand.vmem [shape: f32[8,1], index: 11, kind: input, shape index: {}]   ;;  %s892_s12 = inlined_call_operand.hbm [shape: f32[1,128], index: 12, kind: output, shape index: {}]  }
   0x1   :  { %v57_v0 = vld [vmem:[%s880_s0 + $0x78] sm:$0xff]  ;;  %v56_v1 = vld [vmem:[%s880_s0 + $0x70] sm:$0xff] }
   0x2   :  { %492 = vmatpush.xpose.msk.msra.mxu0 %vm94_vm0, %v57_v0  ;;  %512 = vmatpush.xpose.msk.msra.mxu1 %vm94_vm0, %v57_v0 }
   0x3   :  { %17 = vsyncpa [#allocation3], 0  ;;  %v55_v2 = vld [vmem:[%s880_s0 + $0x68] sm:$0xff]  ;;  %v54_v3 = vld [vmem:[%s880_s0 + $0x60] sm:$0xff]  ;;  %v607_v7 = vmov 0   ;;  %vm289_vm1 = vcmask 261120  }
   0x4   :  { %v65_v4 = vld [vmem:[%s882_s2 + $0x18] sm:$0xff]  ;;  %v64_v5 = vld [vmem:[%s882_s2 + $0x10] sm:$0xff]  ;;  %545 = vset.pattern.permute.xlu1 %v607_v7  ;;  %544 = vset.pattern.permute.xlu0 %v607_v7  ;;  %v51_v11 = vld [vmem:[%s880_s0 + $0x48] sm:$0xff]  ;;  %s483_s20 = sshll.u32 %s892_s12, 4  ;;  %s484_s20 = int_to_ptr.hbm [resolvable:$true] %s483_s20 }
   0x5   :  { %v53_v6 = vld [vmem:[%s880_s0 + $0x58] sm:$0xff]  ;;  %91 = vperm.xlu0 %544, %v65_v4   ;;  %86 = vperm.xlu1 %545, %v64_v5   ;;  %v52_v8 = vld [vmem:[%s880_s0 + $0x50] sm:$0xff]  ;;  %v50_v12 = vld [vmem:[%s880_s0 + $0x40] sm:$0xff] }
   0x6   :  { %493 = vmatpush.xpose.msk.msra.mxu0 %vm94_vm0, %v56_v1  ;;  %513 = vmatpush.xpose.msk.msra.mxu1 %vm94_vm0, %v56_v1  ;;  %v73_v9 = vld [vmem:[%s884_s4 + $0x18] sm:$0xff]  ;;  %v72_v10 = vld [vmem:[%s884_s4 + $0x10] sm:$0xff]  ;;  %v70_v14 = vld [vmem:[%s884_s4] sm:$0xff] }
   0x7   :  { %546 = vset.pattern.permute.xlu2 %v607_v7  ;;  %v49_v13 = vld [vmem:[%s880_s0 + $0x38] sm:$0xff]  ;;  %v62_v15 = vld [vmem:[%s882_s2] sm:$0xff]  ;;  %v48_v16 = vld [vmem:[%s880_s0 + $0x30] sm:$0xff] }
   0x8   :  { %v47_v17 = vld [vmem:[%s880_s0 + $0x28] sm:$0xff]  ;;  %v259_v18 = vld [vmem:[%s886_s6 + $0x10] sm:$0xff]  ;;  %v268_v19 = vld [vmem:[%s888_s8 + $0x18] sm:$0xff] }
   0x9   :  { %v46_v20 = vld [vmem:[%s880_s0 + $0x20] sm:$0xff]  ;;  %v45_v21 = vld [vmem:[%s880_s0 + $0x18] sm:$0xff]  ;;  %v266_v22 = vld [vmem:[%s888_s8 + $0x8] sm:$0xff] }
   0xa   :  { %494 = vmatpush.xpose.msk.msra.mxu0 %vm94_vm0, %v55_v2  ;;  %514 = vmatpush.xpose.msk.msra.mxu1 %vm94_vm0, %v55_v2  ;;  %v258_v23 = vld [vmem:[%s886_s6 + $0x8] sm:$0xff]  ;;  %v44_v25 = vld [vmem:[%s880_s0 + $0x10] sm:$0xff]  ;;  %v402_v27 = vld [vmem:[%s891_s11] sm:$0xff] }
   0xb   :  { %v63_v24 = vld [vmem:[%s882_s2 + $0x8] sm:$0xff]  ;;  %v265_v28 = vld [vmem:[%s888_s8] sm:$0xff]  ;;  %v260_v33 = vld [vmem:[%s886_s6 + $0x18] sm:$0xff] }
   0xc   :  { %81 = vperm.xlu2 %546, %v63_v24   ;;  %v43_v26 = vld [vmem:[%s880_s0 + $0x8] sm:$0xff]  ;;  %v42_v30 = vld [vmem:[%s880_s0] sm:$0xff]  ;;  %v267_v36 = vld [vmem:[%s888_s8 + $0x10] sm:$0xff] }
   0xd   :  { %205 = vperm.xlu0 %544, %v73_v9   ;;  %200 = vperm.xlu1 %545, %v72_v10   ;;  %v71_v29 = vld [vmem:[%s884_s4 + $0x8] sm:$0xff]  ;;  %v58_v31 = vld [vmem:[%s881_s1] sm:$0xff]  ;;  %v60_v37 = vld [vmem:[%s881_s1 + $0x10] sm:$0xff] }
   0xe   :  { %495 = vmatpush.xpose.msk.msra.mxu0 %vm94_vm0, %v54_v3  ;;  %515 = vmatpush.xpose.msk.msra.mxu1 %vm94_vm0, %v54_v3  ;;  %v66_v32 = vld [vmem:[%s883_s3] sm:$0xff]  ;;  %v59_v34 = vld [vmem:[%s881_s1 + $0x8] sm:$0xff]  ;;  %v68_v38 = vld [vmem:[%s883_s3 + $0x10] sm:$0xff] }
   0xf   :  { %v67_v35 = vld [vmem:[%s883_s3 + $0x8] sm:$0xff]  ;;  %v257_v39 = vld [vmem:[%s886_s6] sm:$0xff]  ;;  %v61_v40 = vld [vmem:[%s881_s1 + $0x18] sm:$0xff] }
  0x10   :  { %v69_v41 = vld [vmem:[%s883_s3 + $0x18] sm:$0xff]  ;;  %v261_v10 = vld [vmem:[%s887_s7] sm:$0xff] }
  0x12   :  { %496 = vmatpush.xpose.msk.msra.mxu0 %vm94_vm0, %v53_v6  ;;  %516 = vmatpush.xpose.msk.msra.mxu1 %vm94_vm0, %v53_v6 }
  0x14   :  { %195 = vperm.xlu2 %546, %v71_v29  }
  0x15   :  { %190 = vperm.xlu1 %545, %v70_v14   ;;  %76 = vperm.xlu0 %544, %v62_v15   ;;  %v255_v14 = vld [vmem:[%s885_s5 + $0x10] sm:$0xff] }
  0x16   :  { %497 = vmatpush.xpose.msk.msra.mxu0 %vm94_vm0, %v52_v8  ;;  %517 = vmatpush.xpose.msk.msra.mxu1 %vm94_vm0, %v52_v8  ;;  %v253_v8 = vld [vmem:[%s885_s5] sm:$0xff]  ;;  %v263_v15 = vld [vmem:[%s887_s7 + $0x10] sm:$0xff] }
  0x1a   :  { %498 = vmatpush.xpose.msk.msra.mxu0 %vm94_vm0, %v51_v11  ;;  %518 = vmatpush.xpose.msk.msra.mxu1 %vm94_vm0, %v51_v11 }
  0x1c   :  { %286 = vperm.xlu2 %546, %v260_v33  }
  0x1d   :  { %281 = vperm.xlu1 %545, %v259_v18   ;;  %352 = vperm.xlu0 %544, %v268_v19  }
  0x1e   :  { %499 = vmatpush.xpose.msk.msra.mxu0 %vm94_vm0, %v50_v12  ;;  %519 = vmatpush.xpose.msk.msra.mxu1 %vm94_vm0, %v50_v12  ;;  %v254_v12 = vld [vmem:[%s885_s5 + $0x8] sm:$0xff] }
  0x22   :  { %500 = vmatpush.xpose.msk.msra.mxu0 %vm94_vm0, %v49_v13  ;;  %520 = vmatpush.xpose.msk.msra.mxu1 %vm94_vm0, %v49_v13  ;;  %v262_v13 = vld [vmem:[%s887_s7 + $0x8] sm:$0xff] }
  0x24   :  { %347 = vperm.xlu2 %546, %v267_v36  }
  0x25   :  { %342 = vperm.xlu1 %545, %v266_v22   ;;  %276 = vperm.xlu0 %544, %v258_v23  }
  0x26   :  { %501 = vmatpush.xpose.msk.msra.mxu0 %vm94_vm0, %v48_v16  ;;  %521 = vmatpush.xpose.msk.msra.mxu1 %vm94_vm0, %v48_v16  ;;  %v256_v16 = vld [vmem:[%s885_s5 + $0x18] sm:$0xff] }
  0x2a   :  { %502 = vmatpush.xpose.msk.msra.mxu0 %vm94_vm0, %v47_v17  ;;  %522 = vmatpush.xpose.msk.msra.mxu1 %vm94_vm0, %v47_v17  ;;  %v264_v17 = vld [vmem:[%s887_s7 + $0x18] sm:$0xff] }
  0x2c   :  { %271 = vperm.xlu2 %546, %v257_v39  }
  0x2d   :  { %452 = vperm.xlu1 %545, %v402_v27   ;;  %337 = vperm.xlu0 %544, %v265_v28  }
  0x2e   :  { %503 = vmatpush.xpose.msk.msra.mxu0 %vm94_vm0, %v46_v20  ;;  %523 = vmatpush.xpose.msk.msra.mxu1 %vm94_vm0, %v46_v20 }
  0x32   :  { %504 = vmatpush.xpose.msk.msra.mxu0 %vm94_vm0, %v45_v21  ;;  %524 = vmatpush.xpose.msk.msra.mxu1 %vm94_vm0, %v45_v21 }
  0x36   :  { %505 = vmatpush.xpose.msk.msra.mxu0 %vm94_vm0, %v44_v25  ;;  %525 = vmatpush.xpose.msk.msra.mxu1 %vm94_vm0, %v44_v25 }
  0x3a   :  { %506 = vmatpush.xpose.msk.msra.mxu0 %vm94_vm0, %v43_v26  ;;  %526 = vmatpush.xpose.msk.msra.mxu1 %vm94_vm0, %v43_v26 }
  0x3e   :  { %507 = vmatpush.xpose.msk.msra.mxu0 %vm94_vm0, %v42_v30  ;;  %527 = vmatpush.xpose.msk.msra.mxu1 %vm94_vm0, %v42_v30 }
  0x41   :  { %508 = vmatmul.msk.f32.vlgmr.msra.gmra.mxu0 %vm94_vm0, %v58_v31  ;;  %528 = vmatmul.msk.f32.vlgmr.msra.gmra.mxu1 %vm94_vm0, %v66_v32 }
  0x49   :  { %509 = vmatmul.msk.f32.gmra.mxu0 %vm94_vm0, %v59_v34  ;;  %529 = vmatmul.msk.f32.gmra.mxu1 %vm94_vm0, %v67_v35 }
  0x51   :  { %510 = vmatmul.msk.f32.gmra.mxu0 %vm94_vm0, %v60_v37  ;;  %530 = vmatmul.msk.f32.gmra.mxu1 %vm94_vm0, %v68_v38 }
  0x59   :  { %511 = vmatmul.msk.f32.gmra.mxu0 %vm94_vm0, %v61_v40  ;;  %531 = vmatmul.msk.f32.gmra.mxu1 %vm94_vm0, %v69_v41 }
  0x66   :  { %v82_v50 = vpop.permute.xlu2 %81 }
  0x6e   :  { %v196_v59 = vpop.permute.xlu2 %195 }
  0x76   :  { %v287_v20 = vpop.permute.xlu2 %286 }
  0x77   :  { %v92_v44 = vpop.permute.xlu0 %91  ;;  %v87_v47 = vpop.permute.xlu1 %86 }
  0x7e   :  { %v348_v27 = vpop.permute.xlu2 %347 }
  0x7f   :  { %v206_v51 = vpop.permute.xlu0 %205  ;;  %v201_v52 = vpop.permute.xlu1 %200 }
  0x86   :  { %v272_v37 = vpop.permute.xlu2 %271 }
  0x87   :  { %v77_v61 = vpop.permute.xlu0 %76  ;;  %v191_v63 = vpop.permute.xlu1 %190 }
  0x8f   :  { %v353_v22 = vpop.permute.xlu0 %352  ;;  %v282_v25 = vpop.permute.xlu1 %281 }
  0x97   :  { %v277_v28 = vpop.permute.xlu0 %276  ;;  %v343_v35 = vpop.permute.xlu1 %342 }
  0x9f   :  { %v338_v39 = vpop.permute.xlu0 %337 }
  0xbe   :  { %v172_v42 = vpop.f32.mrf.mxu0  ;;  %v237_v43 = vpop.f32.mrf.mxu1 }
  0xbf   :  { %v173_v0 = vadd.f32 %v172_v42, %v77_v61  ;;  %v238_v1 = vadd.f32 %v237_v43, %v191_v63 }
  0xc6   :  { %v175_v45 = vpop.f32.mrf.mxu0  ;;  %v240_v46 = vpop.f32.mrf.mxu1 }
  0xc7   :  { %v176_v60 = vadd.f32 %v175_v45, %v82_v50  ;;  %v241_v62 = vadd.f32 %v240_v46, %v196_v59  ;;  %v401_v50 = vld [vmem:[%s890_s10] sm:$0xff] }
  0xce   :  { %v178_v48 = vpop.f32.mrf.mxu0  ;;  %v243_v49 = vpop.f32.mrf.mxu1 }
  0xcf   :  { %v179_v55 = vadd.f32 %v178_v48, %v87_v47  ;;  %v244_v58 = vadd.f32 %v243_v49, %v201_v52  ;;  %v400_v48 = vld [vmem:[%s889_s9] sm:$0xff]  ;;  %s608_s9 = smov [#allocation2]  }
  0xd0   :  { %s481_s10 = sshll.u32 %s608_s9, 4  ;;  %s482_s10 = int_to_ptr.vmem [resolvable:$true] %s481_s10 }
  0xd6   :  { %v181_v53 = vpop.f32.mrf.mxu0  ;;  %v246_v54 = vpop.f32.mrf.mxu1 }
  0xd7   :  { %v182_v56 = vadd.f32 %v181_v53, %v92_v44  ;;  %v247_v57 = vadd.f32 %v246_v54, %v206_v51 }
  0xd9   :  { %547 = vtanh.f32 %v182_v56 }
  0xda   :  { %549 = vtanh.f32 %v247_v57 }
  0xdb   :  { %551 = vtanh.f32 %v179_v55  ;;  %v453_v55 = vpop.permute.xlu1 %452 }
  0xdc   :  { %553 = vtanh.f32 %v244_v58 }
  0xdd   :  { %555 = vtanh.f32 %v176_v60 }
  0xde   :  { %557 = vtanh.f32 %v241_v62 }
  0xdf   :  { %v548_v2 = vpop.eup %547  ;;  %559 = vtanh.f32 %v173_v0 }
  0xe0   :  { %v550_v3 = vpop.eup %549  ;;  %561 = vtanh.f32 %v238_v1  ;;  %314 = vmatpush.msra.mxu2 %v548_v2 }
  0xe1   :  { %v552_v4 = vpop.eup %551  ;;  %379 = vmatpush.msra.mxu3 %v550_v3 }
  0xe2   :  { %v554_v5 = vpop.eup %553  ;;  %315 = vmatpush.msra.mxu2 %v552_v4 }
  0xe3   :  { %v556_v6 = vpop.eup %555  ;;  %380 = vmatpush.msra.mxu3 %v554_v5 }
  0xe4   :  { %v558_v7 = vpop.eup %557  ;;  %316 = vmatpush.msra.mxu2 %v556_v6 }
  0xe5   :  { %v560_v9 = vpop.eup %559  ;;  %381 = vmatpush.msra.mxu3 %v558_v7 }
  0xe6   :  { %v562_v11 = vpop.eup %561  ;;  %317 = vmatpush.msra.mxu2 %v560_v9 }
  0xe7   :  { %382 = vmatpush.msra.mxu3 %v562_v11  ;;  %532 = vmatmul.msk.f32.vlgmr.msra.gmra.mxu2 %vm289_vm1, %v253_v8 }
  0xe8   :  { %536 = vmatmul.msk.f32.vlgmr.msra.gmra.mxu3 %vm289_vm1, %v261_v10 }
  0xef   :  { %533 = vmatmul.msk.f32.gmra.mxu2 %vm289_vm1, %v254_v12 }
  0xf0   :  { %537 = vmatmul.msk.f32.gmra.mxu3 %vm289_vm1, %v262_v13 }
  0xf7   :  { %534 = vmatmul.msk.f32.gmra.mxu2 %vm289_vm1, %v255_v14 }
  0xf8   :  { %538 = vmatmul.msk.f32.gmra.mxu3 %vm289_vm1, %v263_v15 }
  0xff   :  { %535 = vmatmul.msk.f32.gmra.mxu2 %vm289_vm1, %v256_v16 }
 0x100   :  { %539 = vmatmul.msk.f32.gmra.mxu3 %vm289_vm1, %v264_v17 }
 0x16a   :  { %v319_v18 = vpop.f32.mrf.mxu2 }
 0x16b   :  { %v384_v19 = vpop.f32.mrf.mxu3  ;;  %v320_v40 = vadd.f32 %v319_v18, %v272_v37 }
 0x16c   :  { %v385_v41 = vadd.f32 %v384_v19, %v338_v39 }
 0x172   :  { %v322_v21 = vpop.f32.mrf.mxu2 }
 0x173   :  { %v387_v23 = vpop.f32.mrf.mxu3  ;;  %v323_v36 = vadd.f32 %v322_v21, %v277_v28 }
 0x174   :  { %v388_v38 = vadd.f32 %v387_v23, %v343_v35 }
 0x17a   :  { %v325_v24 = vpop.f32.mrf.mxu2 }
 0x17b   :  { %v390_v26 = vpop.f32.mrf.mxu3  ;;  %v326_v30 = vadd.f32 %v325_v24, %v282_v25 }
 0x17c   :  { %v391_v33 = vadd.f32 %v390_v26, %v348_v27 }
 0x182   :  { %v328_v29 = vpop.f32.mrf.mxu2 }
 0x183   :  { %v329_v31 = vadd.f32 %v328_v29, %v287_v20  ;;  %v393_v32 = vpop.f32.mrf.mxu3 }
 0x184   :  { %v394_v34 = vadd.f32 %v393_v32, %v353_v22 }
 0x185   :  { %563 = vtanh.f32 %v329_v31 }
 0x186   :  { %565 = vtanh.f32 %v394_v34 }
 0x187   :  { %567 = vtanh.f32 %v326_v30 }
 0x188   :  { %569 = vtanh.f32 %v391_v33 }
 0x189   :  { %571 = vtanh.f32 %v323_v36 }
 0x18a   :  { %573 = vtanh.f32 %v388_v38 }
 0x18b   :  { %v564_v42 = vpop.eup %563  ;;  %575 = vtanh.f32 %v320_v40 }
 0x18c   :  { %v566_v43 = vpop.eup %565  ;;  %577 = vtanh.f32 %v385_v41  ;;  %418 = vmatpush.msrb.mxu2 %v564_v42 }
 0x18d   :  { %v568_v44 = vpop.eup %567  ;;  %441 = vmatpush.msrb.mxu3 %v566_v43 }
 0x18e   :  { %v570_v45 = vpop.eup %569  ;;  %419 = vmatpush.msrb.mxu2 %v568_v44 }
 0x18f   :  { %v572_v46 = vpop.eup %571  ;;  %442 = vmatpush.msrb.mxu3 %v570_v45 }
 0x190   :  { %v574_v47 = vpop.eup %573  ;;  %420 = vmatpush.msrb.mxu2 %v572_v46 }
 0x191   :  { %v576_v49 = vpop.eup %575  ;;  %443 = vmatpush.msrb.mxu3 %v574_v47 }
 0x192   :  { %v578_v51 = vpop.eup %577  ;;  %421 = vmatpush.msrb.mxu2 %v576_v49 }
 0x193   :  { %444 = vmatpush.msrb.mxu3 %v578_v51  ;;  %540 = vmatmul.msk.f32.vlgmr.msrb.gmra.mxu2 %vm289_vm1, %v400_v48 }
 0x194   :  { %541 = vmatmul.msk.f32.vlgmr.msrb.gmra.mxu3 %vm289_vm1, %v401_v50 }
 0x216   :  { %v423_v52 = vpop.f32.mrf.mxu2 }
 0x217   :  { %v446_v53 = vpop.f32.mrf.mxu3 }
 0x218   :  { %v449_v54 = vsub.f32 %v423_v52, %v446_v53 }
 0x21a   :  { %v455_v56 = vadd.f32 %v453_v55, %v449_v54 }
 0x21c   :  { %v456_v57 = vmul.f32 %v455_v56, %v455_v56 }
 0x21e   :  { %v457_v58 = vrot.slane %v456_v57, 4 }
 0x220   :  { %v458_v59 = vadd.f32 %v457_v58, %v456_v57 }
 0x222   :  { %v459_v60 = vrot.slane %v458_v59, 2 }
 0x224   :  { %v460_v61 = vadd.f32 %v459_v60, %v458_v59 }
 0x226   :  { %v461_v62 = vrot.slane %v460_v61, 1 }
 0x228   :  { %v462_v63 = vadd.f32 %v461_v62, %v460_v61 }
 0x22a   :  { %579 = vrsqrt.f32 %v462_v63  ;;  %vm470_vm2 = vcmp.eq.f32.partialorder %v462_v63, inf  ;;  %v473_v7 = vand.u32 2147483648, %v462_v63  ;;  %vm472_vm3 = vcmp.eq.f32.partialorder %v462_v63, 0.0 }
 0x230   :  { %v580_v0 = vpop.eup %579 }
 0x231   :  { %v464_v1 = vmul.f32 %v580_v0, %v462_v63 }
 0x233   :  { %v465_v2 = vmul.f32 %v580_v0, %v464_v1 }
 0x235   :  { %v466_v3 = vmul.f32 0.5, %v465_v2 }
 0x237   :  { %v467_v4 = vsub.f32 1.5, %v466_v3 }
 0x239   :  { %v468_v5 = vmul.f32 %v580_v0, %v467_v4 }
 0x23b   :  { %v469_v6 = vmul.f32 %v468_v5, %v462_v63 }
 0x23d   :  { %v471_v8 = vsel %vm470_vm2, %v462_v63, %v469_v6 }
 0x23e   :  { %v474_v9 = vsel %vm472_vm3, %v473_v7, %v471_v8 }
 0x23f   :  { %475 = vst [vmem:[#allocation2] sm:$0x1] %v474_v9 }
 0x240   :  { %486 = dma.vmem_to_hbm [thread:$0]  %s482_s10, 16, %s484_s20, [#allocation3]  }
 0x241   :  { %605 = dma.done.wait [#allocation3], 16  }
 0x242   :  { %606 = vsyncadd [#allocation3], 4294967280 }
 0x243   :  { %491 = vsyncpa [#allocation3], 1 }

// kernel: tpu_custom_call.1
= control target key start
LH: loop header
LB: loop body
LE: loop exit
PB: predicated region body
PF: predicated region fallthrough
CT: control target
= control target key end

     0   :  { %vm94_vm0 = vcmask 31744   ;;  %s880_s0 = inlined_call_operand.vmem [shape: f32[128,4], index: 0, kind: input, shape index: {}]   ;;  %s881_s1 = inlined_call_operand.vmem [shape: f32[32,4], index: 1, kind: input, shape index: {}]   ;;  %s882_s2 = inlined_call_operand.vmem [shape: f32[32,1], index: 2, kind: input, shape index: {}]   ;;  %s883_s3 = inlined_call_operand.vmem [shape: f32[32,4], index: 3, kind: input, shape index: {}]   ;;  %s884_s4 = inlined_call_operand.vmem [shape: f32[32,1], index: 4, kind: input, shape index: {}]   ;;  %s885_s5 = inlined_call_operand.vmem [shape: f32[32,32], index: 5, kind: input, shape index: {}]   ;;  %s886_s6 = inlined_call_operand.vmem [shape: f32[32,1], index: 6, kind: input, shape index: {}]   ;;  %s887_s7 = inlined_call_operand.vmem [shape: f32[32,32], index: 7, kind: input, shape index: {}]   ;;  %s888_s8 = inlined_call_operand.vmem [shape: f32[32,1], index: 8, kind: input, shape index: {}]   ;;  %s889_s9 = inlined_call_operand.vmem [shape: f32[8,32], index: 9, kind: input, shape index: {}]   ;;  %s890_s10 = inlined_call_operand.vmem [shape: f32[8,32], index: 10, kind: input, shape index: {}]   ;;  %s891_s11 = inlined_call_operand.vmem [shape: f32[8,1], index: 11, kind: input, shape index: {}]   ;;  %s892_s12 = inlined_call_operand.hbm [shape: f32[1,128], index: 12, kind: output, shape index: {}]  }
   0x1   :  { %v57_v0 = vld [vmem:[%s880_s0 + $0x78] sm:$0xff]  ;;  %v56_v1 = vld [vmem:[%s880_s0 + $0x70] sm:$0xff] }
   0x2   :  { %492 = vmatpush.xpose.msk.msra.mxu0 %vm94_vm0, %v57_v0  ;;  %512 = vmatpush.xpose.msk.msra.mxu1 %vm94_vm0, %v57_v0 }
   0x3   :  { %17 = vsyncpa [#allocation3], 0  ;;  %v55_v2 = vld [vmem:[%s880_s0 + $0x68] sm:$0xff]  ;;  %v54_v3 = vld [vmem:[%s880_s0 + $0x60] sm:$0xff]  ;;  %v607_v7 = vmov 0   ;;  %vm289_vm1 = vcmask 261120  }
   0x4   :  { %v65_v4 = vld [vmem:[%s882_s2 + $0x18] sm:$0xff]  ;;  %v64_v5 = vld [vmem:[%s882_s2 + $0x10] sm:$0xff]  ;;  %545 = vset.pattern.permute.xlu1 %v607_v7  ;;  %544 = vset.pattern.permute.xlu0 %v607_v7  ;;  %v51_v11 = vld [vmem:[%s880_s0 + $0x48] sm:$0xff]  ;;  %s483_s20 = sshll.u32 %s892_s12, 4  ;;  %s484_s20 = int_to_ptr.hbm [resolvable:$true] %s483_s20 }
   0x5   :  { %v53_v6 = vld [vmem:[%s880_s0 + $0x58] sm:$0xff]  ;;  %91 = vperm.xlu0 %544, %v65_v4   ;;  %86 = vperm.xlu1 %545, %v64_v5   ;;  %v52_v8 = vld [vmem:[%s880_s0 + $0x50] sm:$0xff]  ;;  %v50_v12 = vld [vmem:[%s880_s0 + $0x40] sm:$0xff] }
   0x6   :  { %493 = vmatpush.xpose.msk.msra.mxu0 %vm94_vm0, %v56_v1  ;;  %513 = vmatpush.xpose.msk.msra.mxu1 %vm94_vm0, %v56_v1  ;;  %v73_v9 = vld [vmem:[%s884_s4 + $0x18] sm:$0xff]  ;;  %v72_v10 = vld [vmem:[%s884_s4 + $0x10] sm:$0xff]  ;;  %v70_v14 = vld [vmem:[%s884_s4] sm:$0xff] }
   0x7   :  { %546 = vset.pattern.permute.xlu2 %v607_v7  ;;  %v49_v13 = vld [vmem:[%s880_s0 + $0x38] sm:$0xff]  ;;  %v62_v15 = vld [vmem:[%s882_s2] sm:$0xff]  ;;  %v48_v16 = vld [vmem:[%s880_s0 + $0x30] sm:$0xff] }
   0x8   :  { %v47_v17 = vld [vmem:[%s880_s0 + $0x28] sm:$0xff]  ;;  %v259_v18 = vld [vmem:[%s886_s6 + $0x10] sm:$0xff]  ;;  %v268_v19 = vld [vmem:[%s888_s8 + $0x18] sm:$0xff] }
   0x9   :  { %v46_v20 = vld [vmem:[%s880_s0 + $0x20] sm:$0xff]  ;;  %v45_v21 = vld [vmem:[%s880_s0 + $0x18] sm:$0xff]  ;;  %v266_v22 = vld [vmem:[%s888_s8 + $0x8] sm:$0xff] }
   0xa   :  { %494 = vmatpush.xpose.msk.msra.mxu0 %vm94_vm0, %v55_v2  ;;  %514 = vmatpush.xpose.msk.msra.mxu1 %vm94_vm0, %v55_v2  ;;  %v258_v23 = vld [vmem:[%s886_s6 + $0x8] sm:$0xff]  ;;  %v44_v25 = vld [vmem:[%s880_s0 + $0x10] sm:$0xff]  ;;  %v402_v27 = vld [vmem:[%s891_s11] sm:$0xff] }
   0xb   :  { %v63_v24 = vld [vmem:[%s882_s2 + $0x8] sm:$0xff]  ;;  %v265_v28 = vld [vmem:[%s888_s8] sm:$0xff]  ;;  %v260_v33 = vld [vmem:[%s886_s6 + $0x18] sm:$0xff] }
   0xc   :  { %81 = vperm.xlu2 %546, %v63_v24   ;;  %v43_v26 = vld [vmem:[%s880_s0 + $0x8] sm:$0xff]  ;;  %v42_v30 = vld [vmem:[%s880_s0] sm:$0xff]  ;;  %v267_v36 = vld [vmem:[%s888_s8 + $0x10] sm:$0xff] }
   0xd   :  { %205 = vperm.xlu0 %544, %v73_v9   ;;  %200 = vperm.xlu1 %545, %v72_v10   ;;  %v71_v29 = vld [vmem:[%s884_s4 + $0x8] sm:$0xff]  ;;  %v58_v31 = vld [vmem:[%s881_s1] sm:$0xff]  ;;  %v60_v37 = vld [vmem:[%s881_s1 + $0x10] sm:$0xff] }
   0xe   :  { %495 = vmatpush.xpose.msk.msra.mxu0 %vm94_vm0, %v54_v3  ;;  %515 = vmatpush.xpose.msk.msra.mxu1 %vm94_vm0, %v54_v3  ;;  %v66_v32 = vld [vmem:[%s883_s3] sm:$0xff]  ;;  %v59_v34 = vld [vmem:[%s881_s1 + $0x8] sm:$0xff]  ;;  %v68_v38 = vld [vmem:[%s883_s3 + $0x10] sm:$0xff] }
   0xf   :  { %v67_v35 = vld [vmem:[%s883_s3 + $0x8] sm:$0xff]  ;;  %v257_v39 = vld [vmem:[%s886_s6] sm:$0xff]  ;;  %v61_v40 = vld [vmem:[%s881_s1 + $0x18] sm:$0xff] }
  0x10   :  { %v69_v41 = vld [vmem:[%s883_s3 + $0x18] sm:$0xff]  ;;  %v261_v10 = vld [vmem:[%s887_s7] sm:$0xff] }
  0x12   :  { %496 = vmatpush.xpose.msk.msra.mxu0 %vm94_vm0, %v53_v6  ;;  %516 = vmatpush.xpose.msk.msra.mxu1 %vm94_vm0, %v53_v6 }
  0x14   :  { %195 = vperm.xlu2 %546, %v71_v29  }
  0x15   :  { %190 = vperm.xlu1 %545, %v70_v14   ;;  %76 = vperm.xlu0 %544, %v62_v15   ;;  %v255_v14 = vld [vmem:[%s885_s5 + $0x10] sm:$0xff] }
  0x16   :  { %497 = vmatpush.xpose.msk.msra.mxu0 %vm94_vm0, %v52_v8  ;;  %517 = vmatpush.xpose.msk.msra.mxu1 %vm94_vm0, %v52_v8  ;;  %v253_v8 = vld [vmem:[%s885_s5] sm:$0xff]  ;;  %v263_v15 = vld [vmem:[%s887_s7 + $0x10] sm:$0xff] }
  0x1a   :  { %498 = vmatpush.xpose.msk.msra.mxu0 %vm94_vm0, %v51_v11  ;;  %518 = vmatpush.xpose.msk.msra.mxu1 %vm94_vm0, %v51_v11 }
  0x1c   :  { %286 = vperm.xlu2 %546, %v260_v33  }
  0x1d   :  { %281 = vperm.xlu1 %545, %v259_v18   ;;  %352 = vperm.xlu0 %544, %v268_v19  }
  0x1e   :  { %499 = vmatpush.xpose.msk.msra.mxu0 %vm94_vm0, %v50_v12  ;;  %519 = vmatpush.xpose.msk.msra.mxu1 %vm94_vm0, %v50_v12  ;;  %v254_v12 = vld [vmem:[%s885_s5 + $0x8] sm:$0xff] }
  0x22   :  { %500 = vmatpush.xpose.msk.msra.mxu0 %vm94_vm0, %v49_v13  ;;  %520 = vmatpush.xpose.msk.msra.mxu1 %vm94_vm0, %v49_v13  ;;  %v262_v13 = vld [vmem:[%s887_s7 + $0x8] sm:$0xff] }
  0x24   :  { %347 = vperm.xlu2 %546, %v267_v36  }
  0x25   :  { %342 = vperm.xlu1 %545, %v266_v22   ;;  %276 = vperm.xlu0 %544, %v258_v23  }
  0x26   :  { %501 = vmatpush.xpose.msk.msra.mxu0 %vm94_vm0, %v48_v16  ;;  %521 = vmatpush.xpose.msk.msra.mxu1 %vm94_vm0, %v48_v16  ;;  %v256_v16 = vld [vmem:[%s885_s5 + $0x18] sm:$0xff] }
  0x2a   :  { %502 = vmatpush.xpose.msk.msra.mxu0 %vm94_vm0, %v47_v17  ;;  %522 = vmatpush.xpose.msk.msra.mxu1 %vm94_vm0, %v47_v17  ;;  %v264_v17 = vld [vmem:[%s887_s7 + $0x18] sm:$0xff] }
  0x2c   :  { %271 = vperm.xlu2 %546, %v257_v39  }
  0x2d   :  { %452 = vperm.xlu1 %545, %v402_v27   ;;  %337 = vperm.xlu0 %544, %v265_v28  }
  0x2e   :  { %503 = vmatpush.xpose.msk.msra.mxu0 %vm94_vm0, %v46_v20  ;;  %523 = vmatpush.xpose.msk.msra.mxu1 %vm94_vm0, %v46_v20 }
  0x32   :  { %504 = vmatpush.xpose.msk.msra.mxu0 %vm94_vm0, %v45_v21  ;;  %524 = vmatpush.xpose.msk.msra.mxu1 %vm94_vm0, %v45_v21 }
  0x36   :  { %505 = vmatpush.xpose.msk.msra.mxu0 %vm94_vm0, %v44_v25  ;;  %525 = vmatpush.xpose.msk.msra.mxu1 %vm94_vm0, %v44_v25 }
  0x3a   :  { %506 = vmatpush.xpose.msk.msra.mxu0 %vm94_vm0, %v43_v26  ;;  %526 = vmatpush.xpose.msk.msra.mxu1 %vm94_vm0, %v43_v26 }
  0x3e   :  { %507 = vmatpush.xpose.msk.msra.mxu0 %vm94_vm0, %v42_v30  ;;  %527 = vmatpush.xpose.msk.msra.mxu1 %vm94_vm0, %v42_v30 }
  0x41   :  { %508 = vmatmul.msk.f32.vlgmr.msra.gmra.mxu0 %vm94_vm0, %v58_v31  ;;  %528 = vmatmul.msk.f32.vlgmr.msra.gmra.mxu1 %vm94_vm0, %v66_v32 }
  0x49   :  { %509 = vmatmul.msk.f32.gmra.mxu0 %vm94_vm0, %v59_v34  ;;  %529 = vmatmul.msk.f32.gmra.mxu1 %vm94_vm0, %v67_v35 }
  0x51   :  { %510 = vmatmul.msk.f32.gmra.mxu0 %vm94_vm0, %v60_v37  ;;  %530 = vmatmul.msk.f32.gmra.mxu1 %vm94_vm0, %v68_v38 }
  0x59   :  { %511 = vmatmul.msk.f32.gmra.mxu0 %vm94_vm0, %v61_v40  ;;  %531 = vmatmul.msk.f32.gmra.mxu1 %vm94_vm0, %v69_v41 }
  0x66   :  { %v82_v50 = vpop.permute.xlu2 %81 }
  0x6e   :  { %v196_v59 = vpop.permute.xlu2 %195 }
  0x76   :  { %v287_v20 = vpop.permute.xlu2 %286 }
  0x77   :  { %v92_v44 = vpop.permute.xlu0 %91  ;;  %v87_v47 = vpop.permute.xlu1 %86 }
  0x7e   :  { %v348_v27 = vpop.permute.xlu2 %347 }
  0x7f   :  { %v206_v51 = vpop.permute.xlu0 %205  ;;  %v201_v52 = vpop.permute.xlu1 %200 }
  0x86   :  { %v272_v37 = vpop.permute.xlu2 %271 }
  0x87   :  { %v77_v61 = vpop.permute.xlu0 %76  ;;  %v191_v63 = vpop.permute.xlu1 %190 }
  0x8f   :  { %v353_v22 = vpop.permute.xlu0 %352  ;;  %v282_v25 = vpop.permute.xlu1 %281 }
  0x97   :  { %v277_v28 = vpop.permute.xlu0 %276  ;;  %v343_v35 = vpop.permute.xlu1 %342 }
  0x9f   :  { %v338_v39 = vpop.permute.xlu0 %337 }
  0xbe   :  { %v172_v42 = vpop.f32.mrf.mxu0  ;;  %v237_v43 = vpop.f32.mrf.mxu1 }
  0xbf   :  { %v173_v0 = vadd.f32 %v172_v42, %v77_v61  ;;  %v238_v1 = vadd.f32 %v237_v43, %v191_v63 }
  0xc6   :  { %v175_v45 = vpop.f32.mrf.mxu0  ;;  %v240_v46 = vpop.f32.mrf.mxu1 }
  0xc7   :  { %v176_v60 = vadd.f32 %v175_v45, %v82_v50  ;;  %v241_v62 = vadd.f32 %v240_v46, %v196_v59  ;;  %v401_v50 = vld [vmem:[%s890_s10] sm:$0xff] }
  0xce   :  { %v178_v48 = vpop.f32.mrf.mxu0  ;;  %v243_v49 = vpop.f32.mrf.mxu1 }
  0xcf   :  { %v179_v55 = vadd.f32 %v178_v48, %v87_v47  ;;  %v244_v58 = vadd.f32 %v243_v49, %v201_v52  ;;  %v400_v48 = vld [vmem:[%s889_s9] sm:$0xff]  ;;  %s608_s9 = smov [#allocation2]  }
  0xd0   :  { %s481_s10 = sshll.u32 %s608_s9, 4  ;;  %s482_s10 = int_to_ptr.vmem [resolvable:$true] %s481_s10 }
  0xd6   :  { %v181_v53 = vpop.f32.mrf.mxu0  ;;  %v246_v54 = vpop.f32.mrf.mxu1 }
  0xd7   :  { %v182_v56 = vadd.f32 %v181_v53, %v92_v44  ;;  %v247_v57 = vadd.f32 %v246_v54, %v206_v51 }
  0xd9   :  { %547 = vtanh.f32 %v182_v56 }
  0xda   :  { %549 = vtanh.f32 %v247_v57 }
  0xdb   :  { %551 = vtanh.f32 %v179_v55  ;;  %v453_v55 = vpop.permute.xlu1 %452 }
  0xdc   :  { %553 = vtanh.f32 %v244_v58 }
  0xdd   :  { %555 = vtanh.f32 %v176_v60 }
  0xde   :  { %557 = vtanh.f32 %v241_v62 }
  0xdf   :  { %v548_v2 = vpop.eup %547  ;;  %559 = vtanh.f32 %v173_v0 }
  0xe0   :  { %v550_v3 = vpop.eup %549  ;;  %561 = vtanh.f32 %v238_v1  ;;  %314 = vmatpush.msra.mxu2 %v548_v2 }
  0xe1   :  { %v552_v4 = vpop.eup %551  ;;  %379 = vmatpush.msra.mxu3 %v550_v3 }
  0xe2   :  { %v554_v5 = vpop.eup %553  ;;  %315 = vmatpush.msra.mxu2 %v552_v4 }
  0xe3   :  { %v556_v6 = vpop.eup %555  ;;  %380 = vmatpush.msra.mxu3 %v554_v5 }
  0xe4   :  { %v558_v7 = vpop.eup %557  ;;  %316 = vmatpush.msra.mxu2 %v556_v6 }
  0xe5   :  { %v560_v9 = vpop.eup %559  ;;  %381 = vmatpush.msra.mxu3 %v558_v7 }
  0xe6   :  { %v562_v11 = vpop.eup %561  ;;  %317 = vmatpush.msra.mxu2 %v560_v9 }
  0xe7   :  { %382 = vmatpush.msra.mxu3 %v562_v11  ;;  %532 = vmatmul.msk.f32.vlgmr.msra.gmra.mxu2 %vm289_vm1, %v253_v8 }
  0xe8   :  { %536 = vmatmul.msk.f32.vlgmr.msra.gmra.mxu3 %vm289_vm1, %v261_v10 }
  0xef   :  { %533 = vmatmul.msk.f32.gmra.mxu2 %vm289_vm1, %v254_v12 }
  0xf0   :  { %537 = vmatmul.msk.f32.gmra.mxu3 %vm289_vm1, %v262_v13 }
  0xf7   :  { %534 = vmatmul.msk.f32.gmra.mxu2 %vm289_vm1, %v255_v14 }
  0xf8   :  { %538 = vmatmul.msk.f32.gmra.mxu3 %vm289_vm1, %v263_v15 }
  0xff   :  { %535 = vmatmul.msk.f32.gmra.mxu2 %vm289_vm1, %v256_v16 }
 0x100   :  { %539 = vmatmul.msk.f32.gmra.mxu3 %vm289_vm1, %v264_v17 }
 0x16a   :  { %v319_v18 = vpop.f32.mrf.mxu2 }
 0x16b   :  { %v384_v19 = vpop.f32.mrf.mxu3  ;;  %v320_v40 = vadd.f32 %v319_v18, %v272_v37 }
 0x16c   :  { %v385_v41 = vadd.f32 %v384_v19, %v338_v39 }
 0x172   :  { %v322_v21 = vpop.f32.mrf.mxu2 }
 0x173   :  { %v387_v23 = vpop.f32.mrf.mxu3  ;;  %v323_v36 = vadd.f32 %v322_v21, %v277_v28 }
 0x174   :  { %v388_v38 = vadd.f32 %v387_v23, %v343_v35 }
 0x17a   :  { %v325_v24 = vpop.f32.mrf.mxu2 }
 0x17b   :  { %v390_v26 = vpop.f32.mrf.mxu3  ;;  %v326_v30 = vadd.f32 %v325_v24, %v282_v25 }
 0x17c   :  { %v391_v33 = vadd.f32 %v390_v26, %v348_v27 }
 0x182   :  { %v328_v29 = vpop.f32.mrf.mxu2 }
 0x183   :  { %v329_v31 = vadd.f32 %v328_v29, %v287_v20  ;;  %v393_v32 = vpop.f32.mrf.mxu3 }
 0x184   :  { %v394_v34 = vadd.f32 %v393_v32, %v353_v22 }
 0x185   :  { %563 = vtanh.f32 %v329_v31 }
 0x186   :  { %565 = vtanh.f32 %v394_v34 }
 0x187   :  { %567 = vtanh.f32 %v326_v30 }
 0x188   :  { %569 = vtanh.f32 %v391_v33 }
 0x189   :  { %571 = vtanh.f32 %v323_v36 }
 0x18a   :  { %573 = vtanh.f32 %v388_v38 }
 0x18b   :  { %v564_v42 = vpop.eup %563  ;;  %575 = vtanh.f32 %v320_v40 }
 0x18c   :  { %v566_v43 = vpop.eup %565  ;;  %577 = vtanh.f32 %v385_v41  ;;  %418 = vmatpush.msrb.mxu2 %v564_v42 }
 0x18d   :  { %v568_v44 = vpop.eup %567  ;;  %441 = vmatpush.msrb.mxu3 %v566_v43 }
 0x18e   :  { %v570_v45 = vpop.eup %569  ;;  %419 = vmatpush.msrb.mxu2 %v568_v44 }
 0x18f   :  { %v572_v46 = vpop.eup %571  ;;  %442 = vmatpush.msrb.mxu3 %v570_v45 }
 0x190   :  { %v574_v47 = vpop.eup %573  ;;  %420 = vmatpush.msrb.mxu2 %v572_v46 }
 0x191   :  { %v576_v49 = vpop.eup %575  ;;  %443 = vmatpush.msrb.mxu3 %v574_v47 }
 0x192   :  { %v578_v51 = vpop.eup %577  ;;  %421 = vmatpush.msrb.mxu2 %v576_v49 }
 0x193   :  { %444 = vmatpush.msrb.mxu3 %v578_v51  ;;  %540 = vmatmul.msk.f32.vlgmr.msrb.gmra.mxu2 %vm289_vm1, %v400_v48 }
 0x194   :  { %541 = vmatmul.msk.f32.vlgmr.msrb.gmra.mxu3 %vm289_vm1, %v401_v50 }
 0x216   :  { %v423_v52 = vpop.f32.mrf.mxu2 }
 0x217   :  { %v446_v53 = vpop.f32.mrf.mxu3 }
 0x218   :  { %v449_v54 = vsub.f32 %v423_v52, %v446_v53 }
 0x21a   :  { %v455_v56 = vadd.f32 %v453_v55, %v449_v54 }
 0x21c   :  { %v456_v57 = vmul.f32 %v455_v56, %v455_v56 }
 0x21e   :  { %v457_v58 = vrot.slane %v456_v57, 4 }
 0x220   :  { %v458_v59 = vadd.f32 %v457_v58, %v456_v57 }
 0x222   :  { %v459_v60 = vrot.slane %v458_v59, 2 }
 0x224   :  { %v460_v61 = vadd.f32 %v459_v60, %v458_v59 }
 0x226   :  { %v461_v62 = vrot.slane %v460_v61, 1 }
 0x228   :  { %v462_v63 = vadd.f32 %v461_v62, %v460_v61 }
 0x22a   :  { %579 = vrsqrt.f32 %v462_v63  ;;  %vm470_vm2 = vcmp.eq.f32.partialorder %v462_v63, inf  ;;  %v473_v7 = vand.u32 2147483648, %v462_v63  ;;  %vm472_vm3 = vcmp.eq.f32.partialorder %v462_v63, 0.0 }
 0x230   :  { %v580_v0 = vpop.eup %579 }
 0x231   :  { %v464_v1 = vmul.f32 %v580_v0, %v462_v63 }
 0x233   :  { %v465_v2 = vmul.f32 %v580_v0, %v464_v1 }
 0x235   :  { %v466_v3 = vmul.f32 0.5, %v465_v2 }
 0x237   :  { %v467_v4 = vsub.f32 1.5, %v466_v3 }
 0x239   :  { %v468_v5 = vmul.f32 %v580_v0, %v467_v4 }
 0x23b   :  { %v469_v6 = vmul.f32 %v468_v5, %v462_v63 }
 0x23d   :  { %v471_v8 = vsel %vm470_vm2, %v462_v63, %v469_v6 }
 0x23e   :  { %v474_v9 = vsel %vm472_vm3, %v473_v7, %v471_v8 }
 0x23f   :  { %475 = vst [vmem:[#allocation2] sm:$0x1] %v474_v9 }
 0x240   :  { %486 = dma.vmem_to_hbm [thread:$0]  %s482_s10, 16, %s484_s20, [#allocation3]  }
 0x241   :  { %605 = dma.done.wait [#allocation3], 16  }
 0x242   :  { %606 = vsyncadd [#allocation3], 4294967280 }
 0x243   :  { %491 = vsyncpa [#allocation3], 1 }

</bundles_post_ra>
